<compile_context>
chip_gen: v7x
topology: tpu7x:2x2x1
jax: 0.10.0
libtpu: 0.0.40
codegen_flags: <defaults>
</compile_context>

<pallas_src>
import functools

import jax
import jax.numpy as jnp
from jax.experimental import pallas as pl
from jax.experimental.pallas import tpu as pltpu


_MULTICORE_MIN_BYTES = 4 * 1024 * 1024   # below this, launch overhead dominates HBM time


@functools.lru_cache(maxsize=None)
def _tpu_resources():
    """Returns (per-core VMEM capacity in bytes, TensorCores per chip), with fallbacks."""
    vmem = 64 << 20
    cores = 0
    got_info = False
    try:
        info = pltpu.get_tpu_info()
        got_info = True
        vmem = int(getattr(info, "vmem_capacity_bytes", vmem))
        for name in ("num_cores", "num_tensor_cores", "tensor_cores_per_chip",
                     "tensorcores_per_chip", "cores_per_chip"):
            v = getattr(info, name, None)
            if v:
                try:
                    cores = int(v)
                    break
                except (TypeError, ValueError):
                    pass
    except Exception:
        pass
    if cores <= 0:
        # Heuristic: the 64 MiB-per-core generation (v7x) has 2 TensorCores per chip;
        # the 128 MiB generations (v5e/v6e) have one.
        cores = (2 if vmem <= (64 << 20) else 1) if got_info else 1
    return vmem, cores


def _vmem_limit(nbytes, vmem_cap):
    hard_cap = max(48 << 20, vmem_cap - (8 << 20))   # leave headroom for compiler scratch
    return int(min(max(nbytes + (8 << 20), 32 << 20), hard_cap))


# ----------------------------- in-kernel channel conv ------------------------------

def _shift_channels(p, s):
    """p: (1, C).  Returns q with q[:, c] = p[:, c + s], zero outside [0, C).

    Implemented with static slices + lane concatenation (no pltpu.roll), so it is
    correct for any C, including C not a multiple of 128.
    """
    c = p.shape[-1]
    if s == 0:
        return p
    if abs(s) >= c:
        return jnp.zeros_like(p)
    z = jnp.zeros((1, abs(s)), p.dtype)
    if s > 0:
        return jnp.concatenate([p[:, s:], z], axis=-1)
    return jnp.concatenate([z, p[:, :c + s]], axis=-1)


def _conv_sigmoid_lanes(p, w_taps, *, k, pad):
    """p: (1, C) f32 pooled means (C on lanes); w_taps: (K, C) f32 depthwise taps.

    Returns sigmoid( sum_j w_taps[j, c] * p[c + j - pad] ) with zero padding outside
    [0, C), i.e. the grouped Conv1d over the channel axis as K shifted FMAs (VPU only,
    no MXU, no (C, C) matrix).
    """
    logits = jnp.zeros_like(p)
    for j in range(k):
        logits = logits + w_taps[j:j + 1, :] * _shift_channels(p, j - pad)
    return jax.nn.sigmoid(logits)


# ----------------------------- fused single-pass path ------------------------------

def _eca_fused_kernel(x_ref, w_ref, o_ref, *, hw, k, pad):
    x = x_ref[...]                                               # (1, C, HW), native dtype
    p = jnp.sum(x, axis=-1, dtype=jnp.float32) * (1.0 / hw)      # (1, C) f32 pooled means
    a = _conv_sigmoid_lanes(p, w_ref[...], k=k, pad=pad)         # (1, C) f32
    o_ref[...] = (x * a.astype(x.dtype)[:, :, None]).astype(o_ref.dtype)


def _eca_fused(x_flat, w_taps, *, k, pad, vmem_cap):
    B, C, HW = x_flat.shape
    itemsize = x_flat.dtype.itemsize
    kern = functools.partial(_eca_fused_kernel, hw=HW, k=k, pad=pad)
    # double-buffered in + out blocks (+ possible f32 reduce temp for sub-f32 x) + taps
    need = 4 * C * HW * itemsize + (C * HW * 4 if itemsize < 4 else 0) + 4 * k * C * 4
    return pl.pallas_call(
        kern,
        out_shape=jax.ShapeDtypeStruct((B, C, HW), x_flat.dtype),
        grid_spec=pltpu.PrefetchScalarGridSpec(
            num_scalar_prefetch=0,
            grid=(B,),
            in_specs=[
                pl.BlockSpec((1, C, HW), lambda b: (b, 0, 0)),
                pl.BlockSpec((k, C), lambda b: (0, 0)),
            ],
            out_specs=pl.BlockSpec((1, C, HW), lambda b: (b, 0, 0)),
        ),
        compiler_params=pltpu.CompilerParams(
            dimension_semantics=("parallel",),
            vmem_limit_bytes=_vmem_limit(need, vmem_cap),
        ),
    )(x_flat, w_taps)


# ------------------------------ HW-tiled two-pass path -----------------------------

def _eca_pool_kernel(x_ref, psum_ref, *, hw, tile, npt):
    s = pl.program_id(1)
    tt = pl.program_id(2)
    gt = s * npt + tt                      # intended global HW-tile index (may be phantom)

    @pl.when(tt == 0)
    def _init():
        psum_ref[...] = jnp.zeros_like(psum_ref)

    x = x_ref[...]                         # (1, C, tile), native dtype
    full = (gt + 1) * tile <= hw           # tile fully inside [0, HW)

    @pl.when(full)
    def _add_full():                       # no masking cost on full tiles
        psum_ref[:, 0, 0, :] += jnp.sum(x, axis=-1, dtype=jnp.float32)

    @pl.when(jnp.logical_not(full))
    def _add_partial():                    # ragged tail, or phantom tile of an uneven split
        lane = jax.lax.broadcasted_iota(jnp.int32, x.shape, 2)
        xm = jnp.where(gt * tile + lane < hw, x, jnp.zeros((), x.dtype))
        psum_ref[:, 0, 0, :] += jnp.sum(xm, axis=-1, dtype=jnp.float32)


def _eca_scale_kernel(x_ref, a_ref, o_ref):
    # (1, C, tile) * (1, C, 1) broadcast, native dtype multiply, single store.
    x = x_ref[...]
    o_ref[...] = (x * a_ref[...].astype(x.dtype)).astype(o_ref.dtype)


def _eca_tiled(x_flat, w_ck, *, k, pad, hw_tile, n_splits, vmem_cap, n_cores):
    B, C, HW = x_flat.shape
    itemsize = x_flat.dtype.itemsize

    if hw_tile is None:
        # Scale pass holds 2 in + 2 out (C, tile) buffers; keep them at ~45% of VMEM.
        # Throughput saturates by ~1-2K lanes, so cap tighter on 64 MiB parts (v7x).
        budget = max(8 << 20, int(0.45 * vmem_cap))
        hw_tile = (budget // (4 * C * itemsize)) // 128 * 128
        cap = 4096 if vmem_cap <= (96 << 20) else 8192
        hw_tile = max(256, min(hw_tile, cap))
    if hw_tile >= HW:
        tile = HW                                    # single full-extent block (always legal)
    else:
        tile = max(128, (hw_tile // 128) * 128)      # lane-aligned tiles
    n_t = pl.cdiv(HW, tile)

    if n_splits is None:
        # Split the pool pass across HW when the batch axis alone cannot feed all cores.
        n_splits = 2 if (n_cores >= 2 and B < n_cores and n_t >= 2) else 1
    n_splits = max(1, min(int(n_splits), n_t))
    npt = pl.cdiv(n_t, n_splits)

    if n_splits * npt == n_t:
        x_pool_map = lambda b, s, t: (b, 0, s * npt + t)
    else:
        # Uneven split: clamp phantom tile indices; the kernel masks their contribution.
        x_pool_map = lambda b, s, t: (b, 0, jnp.minimum(s * npt + t, n_t - 1))

    lim = lambda n: _vmem_limit(n, vmem_cap)
    pool = functools.partial(_eca_pool_kernel, hw=HW, tile=tile, npt=npt)
    psums = pl.pallas_call(
        pool,
        out_shape=jax.ShapeDtypeStruct((B, n_splits, 1, C), jnp.float32),
        grid_spec=pltpu.PrefetchScalarGridSpec(
            num_scalar_prefetch=0,
            grid=(B, n_splits, npt),
            in_specs=[pl.BlockSpec((1, C, tile), x_pool_map)],
            out_specs=pl.BlockSpec((1, 1, 1, C), lambda b, s, t: (b, s, 0, 0)),
        ),
        compiler_params=pltpu.CompilerParams(
            dimension_semantics=("parallel", "parallel", "arbitrary"),
            vmem_limit_bytes=lim(2 * C * tile * itemsize + C * tile * 4 + 8 * C * 4),
        ),
    )(x_flat)

    # Tiny glue (one small XLA fusion): combine split partial sums, K-tap depthwise
    # channel conv, sigmoid, relayout to (B, C, 1).  O(B*C*K) work on a few-KB tensor.
    p = jnp.sum(psums[:, :, 0, :], axis=1) * (1.0 / HW)          # (B, C) f32 pooled means
    p_pad = jnp.pad(p, ((0, 0), (pad, pad)))
    logits = jnp.zeros_like(p)
    for j in range(k):
        logits = logits + w_ck[:, j] * p_pad[:, j:j + C]
    attn = jax.nn.sigmoid(logits)[:, :, None]                    # (B, C, 1) f32

    return pl.pallas_call(
        _eca_scale_kernel,
        out_shape=jax.ShapeDtypeStruct((B, C, HW), x_flat.dtype),
        grid_spec=pltpu.PrefetchScalarGridSpec(
            num_scalar_prefetch=0,
            grid=(B, n_t),
            in_specs=[
                pl.BlockSpec((1, C, tile), lambda b, t: (b, 0, t)),
                pl.BlockSpec((1, C, 1), lambda b, t: (b, 0, 0)),
            ],
            out_specs=pl.BlockSpec((1, C, tile), lambda b, t: (b, 0, t)),
        ),
        compiler_params=pltpu.CompilerParams(
            dimension_semantics=("parallel", "parallel"),
            vmem_limit_bytes=lim(4 * C * tile * itemsize + 4 * C * 4),
        ),
    )(x_flat, attn)


# ------------------------------------ wrapper ---------------------------------------

def eca_forward(x, conv_weight, *, force_tiled=False, hw_tile=None, n_splits=None):
    """x: (B, C, H, W).  conv_weight: (C, 1, K) as in nn.Conv1d(C, C, K, groups=C, bias=False)."""
    B, C, H, W = x.shape
    K = conv_weight.shape[-1]
    pad = (K - 1) // 2
    HW = H * W

    x_flat = x.reshape(B, C, HW)
    itemsize = x_flat.dtype.itemsize

    vmem_cap, n_cores = _tpu_resources()
    fused_budget = (3 * vmem_cap) // 4                       # ~96 MiB v5e/v6e, ~48 MiB v7x
    fused_need = (4 * C * HW * itemsize
                  + (C * HW * 4 if itemsize < 4 else 0)
                  + 4 * K * C * 4)

    # On multi-TensorCore chips, a small-batch fused launch leaves cores idle on a
    # purely HBM-bound kernel; route such runs (if not tiny) to the tiled path whose
    # pool pass gets a core-parallel HW split and whose scale pass is tile-parallel.
    reroute_small_batch = (n_cores >= 2 and B < n_cores
                           and B * C * HW * itemsize >= _MULTICORE_MIN_BYTES)

    if force_tiled or fused_need > fused_budget or reroute_small_batch:
        w_ck = conv_weight[:, 0, :].astype(jnp.float32)                       # (C, K)
        out_flat = _eca_tiled(x_flat, w_ck, k=K, pad=pad, hw_tile=hw_tile,
                              n_splits=n_splits, vmem_cap=vmem_cap, n_cores=n_cores)
    else:
        w_taps = jnp.transpose(conv_weight[:, 0, :], (1, 0)).astype(jnp.float32)  # (K, C)
        out_flat = _eca_fused(x_flat, w_taps, k=K, pad=pad, vmem_cap=vmem_cap)
    return out_flat.reshape(B, C, H, W)


def eca_ref(x, conv_weight):
    """Pure-JAX reference mirroring the PyTorch forward exactly."""
    B, C, H, W = x.shape
    K = conv_weight.shape[-1]
    pad = (K - 1) // 2
    p = x.mean(axis=(2, 3))                                              # (B, C)
    p_pad = jnp.pad(p, ((0, 0), (pad, pad)))
    windows = jnp.stack([p_pad[:, j:j + C] for j in range(K)], axis=-1)  # (B, C, K)
    a = jax.nn.sigmoid(jnp.einsum("bck,ck->bc", windows, conv_weight[:, 0, :]))
    return x * a[:, :, None, None]


if __name__ == "__main__":
    key = jax.random.PRNGKey(0)
    kx1, kx2, kx3, kw1, kw2 = jax.random.split(key, 5)

    # Case 1: C=128, K=3, B=2, 16x16 -> fused path; also forced HW-tiled with a 2-way split.
    C1, K1 = 128, 3
    w1 = jax.random.normal(kw1, (C1, 1, K1), dtype=jnp.float32) * 0.5
    x1 = jax.random.normal(kx1, (2, C1, 16, 16), dtype=jnp.float32)
    ref1 = eca_ref(x1, w1)
    out1 = jax.block_until_ready(eca_forward(x1, w1))
    assert out1.shape == x1.shape
    assert jnp.allclose(out1, ref1, atol=1e-5, rtol=1e-5), "fused path mismatch"
    out1_t = jax.block_until_ready(
        eca_forward(x1, w1, force_tiled=True, hw_tile=128, n_splits=2))
    assert jnp.allclose(out1_t, ref1, atol=1e-5, rtol=1e-5), "tiled (split) path mismatch"

    # Case 2: B=1 and a spatial size (12x12=144) not a multiple of 128: exercises the
    # ragged masked tail (tiled, single split) and the full-extent fused block.
    x2 = jax.random.normal(kx2, (1, C1, 12, 12), dtype=jnp.float32)
    ref2 = eca_ref(x2, w1)
    out2 = jax.block_until_ready(eca_forward(x2, w1))
    out2_t = jax.block_until_ready(
        eca_forward(x2, w1, force_tiled=True, hw_tile=128, n_splits=1))
    assert jnp.allclose(out2, ref2, atol=1e-5, rtol=1e-5), "fused path mismatch (ragged)"
    assert jnp.allclose(out2_t, ref2, atol=1e-5, rtol=1e-5), "tiled path mismatch (ragged)"

    # Case 3: C=96 (not a multiple of 128), K=5 (pad=2), HW=16*24=384 (odd tile count):
    # exercises the concat/slice channel conv for non-128 C and the phantom-tile
    # masking of an uneven 2-way pool split.
    C3, K3 = 96, 5
    w3 = jax.random.normal(kw2, (C3, 1, K3), dtype=jnp.float32) * 0.5
    x3 = jax.random.normal(kx3, (1, C3, 16, 24), dtype=jnp.float32)
    ref3 = eca_ref(x3, w3)
    out3 = jax.block_until_ready(eca_forward(x3, w3))
    out3_t = jax.block_until_ready(
        eca_forward(x3, w3, force_tiled=True, hw_tile=128, n_splits=2))
    assert jnp.allclose(out3, ref3, atol=1e-5, rtol=1e-5), "fused path mismatch (C=96)"
    assert jnp.allclose(out3_t, ref3, atol=1e-5, rtol=1e-5), "tiled path mismatch (C=96)"

    print("KERNEL_OK")
</pallas_src>

<mosaic_0001>
module attributes {stable_mosaic.version = 11 : i64} {
  func.func @_eca_fused_kernel(%arg0: i32, %arg1: memref<1x128x256xf32, #tpu.memory_space<vmem>>, %arg2: memref<3x128xf32, #tpu.memory_space<vmem>>, %arg3: memref<1x128x256xf32, #tpu.memory_space<vmem>>) attributes {dimension_semantics = [#tpu.dimension_semantics<parallel>], iteration_bounds = array<i64: 2>, scalar_prefetch = 0 : i64, scratch_operands = 0 : i64, tpu.core_type = #tpu.core_type<tc>, window_params = [{transform_indices = @transform_0, window_bounds = array<i64: 1, 128, 256>}, {pipeline_mode = #tpu.pipeline_mode<synchronous>, transform_indices = @transform_1, window_bounds = array<i64: 3, 128>}, {transform_indices = @transform_2, window_bounds = array<i64: 1, 128, 256>}]} {
    %c0 = arith.constant 0 : index
    %c0_0 = arith.constant 0 : index
    %c0_1 = arith.constant 0 : index
    %0 = vector.load %arg1[%c0, %c0_0, %c0_1] : memref<1x128x256xf32, #tpu.memory_space<vmem>>, vector<1x128x256xf32>
    %cst = arith.constant dense<0.000000e+00> : vector<1x128xf32>
    %1 = vector.multi_reduction <add>, %0, %cst [2] : vector<1x128x256xf32> to vector<1x128xf32>
    %cst_2 = arith.constant 3.906250e-03 : f32
    %2 = vector.broadcast %cst_2 : f32 to vector<1x128xf32>
    %3 = arith.mulf %1, %2 : vector<1x128xf32>
    %c0_3 = arith.constant 0 : index
    %c0_4 = arith.constant 0 : index
    %4 = vector.load %arg2[%c0_3, %c0_4] : memref<3x128xf32, #tpu.memory_space<vmem>>, vector<3x128xf32>
    %cst_5 = arith.constant 0.000000e+00 : f32
    %5 = vector.broadcast %cst_5 : f32 to vector<1x128xf32>
    %6 = vector.extract_strided_slice %4 {offsets = [0, 0], sizes = [1, 128], strides = [1, 1]} : vector<3x128xf32> to vector<1x128xf32>
    %cst_6 = arith.constant 0.000000e+00 : f32
    %7 = vector.broadcast %cst_6 : f32 to vector<1x1xf32>
    %8 = vector.extract_strided_slice %3 {offsets = [0, 0], sizes = [1, 127], strides = [1, 1]} : vector<1x128xf32> to vector<1x127xf32>
    %9 = tpu.concatenate %7, %8 in 1 : vector<1x1xf32>, vector<1x127xf32> -> vector<1x128xf32>
    %10 = arith.mulf %6, %9 : vector<1x128xf32>
    %11 = arith.addf %5, %10 : vector<1x128xf32>
    %12 = vector.extract_strided_slice %4 {offsets = [1, 0], sizes = [1, 128], strides = [1, 1]} : vector<3x128xf32> to vector<1x128xf32>
    %13 = arith.mulf %12, %3 : vector<1x128xf32>
    %14 = arith.addf %11, %13 : vector<1x128xf32>
    %15 = vector.extract_strided_slice %4 {offsets = [2, 0], sizes = [1, 128], strides = [1, 1]} : vector<3x128xf32> to vector<1x128xf32>
    %cst_7 = arith.constant 0.000000e+00 : f32
    %16 = vector.broadcast %cst_7 : f32 to vector<1x1xf32>
    %17 = vector.extract_strided_slice %3 {offsets = [0, 1], sizes = [1, 127], strides = [1, 1]} : vector<1x128xf32> to vector<1x127xf32>
    %18 = tpu.concatenate %17, %16 in 1 : vector<1x127xf32>, vector<1x1xf32> -> vector<1x128xf32>
    %19 = arith.mulf %15, %18 : vector<1x128xf32>
    %20 = arith.addf %14, %19 : vector<1x128xf32>
    %21 = arith.negf %20 : vector<1x128xf32>
    %22 = math.exp %21 : vector<1x128xf32>
    %cst_8 = arith.constant 1.000000e+00 : f32
    %23 = vector.broadcast %cst_8 : f32 to vector<1x128xf32>
    %24 = arith.addf %23, %22 : vector<1x128xf32>
    %25 = arith.divf %23, %24 : vector<1x128xf32>
    %26 = vector.shape_cast %25 : vector<1x128xf32> to vector<1x128x1xf32>
    %27 = vector.broadcast %26 : vector<1x128x1xf32> to vector<1x128x256xf32>
    %28 = arith.mulf %0, %27 : vector<1x128x256xf32>
    %c0_9 = arith.constant 0 : index
    %c0_10 = arith.constant 0 : index
    %c0_11 = arith.constant 0 : index
    %29 = vector.load %arg3[%c0_9, %c0_10, %c0_11] : memref<1x128x256xf32, #tpu.memory_space<vmem>>, vector<1x128x256xf32>
    tpu.vector_store %arg3[%c0_9, %c0_10, %c0_11], %28 {strides = array<i32>} : memref<1x128x256xf32, #tpu.memory_space<vmem>>, vector<1x128x256xf32>,
    return
  }
  func.func @transform_0(%arg0: i32) -> (i32, i32, i32) {
    %c0_i32 = arith.constant 0 : i32
    %c0_i32_0 = arith.constant 0 : i32
    %c0_i32_1 = arith.constant 0 : i32
    return %arg0, %c0_i32, %c0_i32_0 : i32, i32, i32
  }
  func.func @transform_1(%arg0: i32) -> (i32, i32) {
    %c0_i32 = arith.constant 0 : i32
    %c0_i32_0 = arith.constant 0 : i32
    %c0_i32_1 = arith.constant 0 : i32
    return %c0_i32, %c0_i32_0 : i32, i32
  }
  func.func @transform_2(%arg0: i32) -> (i32, i32, i32) {
    %c0_i32 = arith.constant 0 : i32
    %c0_i32_0 = arith.constant 0 : i32
    %c0_i32_1 = arith.constant 0 : i32
    return %arg0, %c0_i32, %c0_i32_0 : i32, i32, i32
  }
}

</mosaic_0001>

<bundles_post_ra>
// kernel: tpu_custom_call.1
= control target key start
LH: loop header
LB: loop body
LE: loop exit
PB: predicated region body
PF: predicated region fallthrough
CT: control target
= control target key end

     0   :  { %7 = vsyncpa [#allocation3], 0  ;;  %s1931_s0 = inlined_call_operand.hbm [shape: f32[2,128,256], index: 0, kind: input, shape index: {}]   ;;  %s1932_s1 = inlined_call_operand.hbm [shape: f32[3,128], index: 1, kind: input, shape index: {}]   ;;  %s1933_s2 = inlined_call_operand.hbm [shape: f32[2,128,256], index: 2, kind: output, shape index: {}]  }
   0x1   :  { %9 = vsyncpa [#allocation3 + $0x1], 0 }
   0x2   :  { %10 = vsyncpa [#allocation6], 0 }
   0x3   :  { %11 = vsyncpa [#allocation4], 0 }
   0x4   :  { %13 = vsyncpa [#allocation4 + $0x1], 0  ;;  %s1111_s9 = smov 0   ;;  %s1113_s10 = smov 0  }
   0x5   :  { %s1115_s11 = smov 0   ;;  %s1117_s12 = smov 0  }
   0x6 LB: > { %s1132_s13 = sadd.s32 4294967295, %s1087_s12   ;;  %s875_s14 = sadd.s32 4294967294, %s1087_s12   ;;  %s1087_s12 = sphi %s1117_s12, %s2102_s12   ;;  %s1083_s11 = sphi %s1115_s11, %s2101_s11   ;;  %s1079_s10 = sphi %s1113_s10, %s2100_s10   ;;  %s1075_s9 = sphi %s1111_s9, %s2099_s9  }
   0x7   : > { %s1136_s15 = sadd.s32 1, %s1087_s12   ;;  %s26_s16 = sadd.s32 1, %s1083_s11 }
   0x8   : > { %s23_s17 = ssub.s32 %s1087_s12, %s1136_s15  ;;  %p33_p0 = scmp.ne.s32.totalorder %s1083_s11, %s1079_s10 }
   0x9   : > { %p24_p1 = scmp.eq.s32.totalorder %s23_s17, 0  ;;  %p34_p2 = scmp.eq.s32.totalorder %s1087_s12, 0 }
   0xa   : > { %p39_p3 = scmp.ne.s32.totalorder %s1079_s10, %s1075_s9  ;;  %p1934_p4 = scmp.eq.s32.totalorder %s1132_s13, 0 }
   0xb   : > { %s1148_s18 = scalar_select %p24_p1, %s1083_s11, %s26_s16  }
   0xc   : > { %p1150_p5 = por %p34_p2, %p33_p0  ;;  %p1156_p6 = por %p1934_p4, %p39_p3 }
   0xd   : > { %p84_p7 = scmp.eq.s32.totalorder %s1132_s13, 1  ;;  %p90_p8 = scmp.eq.s32.totalorder %s875_s14, 1 }
   0xe   : > { %s1968_s20 = scalar_select %p1156_p6, 1, 0 }
   0xf   : > { %p876_p9 = scmp.ge.s32.totalorder %s1087_s12, 1  ;;  %p97_p10 = scmp.lt.s32.totalorder %s1087_s12, 3 }
  0x10   : > { %p1163_p11 = por %p84_p7, %p33_p0  ;;  %p1167_p12 = por %p90_p8, %p39_p3 }
  0x11   : > { %p1171_p13 = pnand %p876_p9, %p97_p10  ;;  %s1089_s24 = smov [#allocation5]  }
  0x12   : > { %s1969_s21 = scalar_select %p1163_p11, 1, 0 }
  0x13   : > { %s1970_s22 = scalar_select %p1167_p12, 1, 0 }
  0x14   : > { %s1971_s23 = scalar_select %p1171_p13, 1, 0 }
  0x15   : > { %p902_p2 = pneg %p1171_p13  ;;  %s110_s25 = sshll.u32 %s1089_s24, 4  ;;  %s111_s25 = int_to_ptr.vmem [resolvable:$true] %s110_s25 }
  0x16   : > { %p915_p4 = scmp.lt.s32.totalorder %s1087_s12, 2  ;;  %p1972_p0 = scmp.eq.s32.totalorder %s1132_s13, 0 }
  0x17   : > { %s121_s27 = sand.u32 1, %s1083_s11   ;;  %s959_s4 = scalar_lea.hbm %s1932_s1, 64 }
  0x18   : > { %p1181_p7 = pnand %p902_p2, %p1972_p0  ;;  %p1188_p3 = pnand %p915_p4, %p1150_p5 }
  0x19   : > { %s879_s29 = sshll.u32 %s121_s27, 8  ;;  %p960_p8 = scmp.ne.s32.totalorder %s1932_s1, %s959_s4 }
  0x1a   : > { %s1974_s28 = scalar_select %p1188_p3, 1, 0 }
  0x1b   : > { %p961_p9 = pneg %p1181_p7  ;;  %p966_p4 = scmp.lt.u32.totalorder %s959_s4, %s1932_s1 }
  0x1d   : > { %p962_p10 = pnand %p961_p9, %p960_p8 }
  0x1f   : > { %p963_p2 = pneg %p962_p10 }
  0x21   : > { %p968_p5 = pnand %p966_p4, %p963_p2 }
  0x23   : > { %971 = shalt.err (!%p968_p5)
}
  0x24   : > { %s972_s14 = scalar_lea.vmem %s111_s25, 64  ;;  %p980_p11 = scmp.lt.s32.totalorder %s111_s25, %s111_s25 }
  0x25   : > { %p973_p0 = scmp.ne.s32.totalorder %s111_s25, %s972_s14  ;;  %p981_p6 = scmp.lt.s32.totalorder %s972_s14, %s972_s14 }
  0x27   : > { %p975_p1 = pnand %p973_p0, %p961_p9  ;;  %p982_p13 = por %p981_p6, %p980_p11 }
  0x29   : > { %p976_p12 = pneg %p975_p1 }
  0x2b   : > { %p983_p3 = pnand %p982_p13, %p976_p12 }
  0x2d   : > { %986 = shalt.err (!%p983_p3)
}
  0x2e   : > { %905 = dma.hbm_to_vmem [thread:$0]  (!%p1181_p7), %s1932_s1, 64, %s111_s25, [#allocation6]  }
  0x2f   : > { %s892_s19 = sshll.u32 %s1087_s12, 12  ;;  %s125_s24 = scalar_lea.vmem [#allocation2], %s879_s29 }
  0x30   : > { %s132_s30 = sshll.u32 %s125_s24, 4  ;;  %s1212_s5 = scalar_lea.hbm %s1931_s0, %s892_s19  ;;  %s1214_s30 = int_to_ptr.vmem [resolvable:$true] %s132_s30 }
  0x31   : > { %s1216_s26 = scalar_lea.sflag [#allocation3], %s121_s27  ;;  %s987_s6 = scalar_lea.hbm %s1212_s5, 4096 }
  0x32   : > { %p988_p6 = scmp.ne.s32.totalorder %s1212_s5, %s987_s6  ;;  %p1975_p11 = scmp.ne.s32.totalorder %s1974_s28, 0 }
  0x33   : > { %s992_s7 = scalar_lea.hbm %s1931_s0, 8192  ;;  %p993_p7 = scmp.lt.u32.totalorder %s1212_s5, %s1931_s0 }
  0x34   : > { %p989_p12 = pneg %p1975_p11  ;;  %p994_p3 = scmp.lt.u32.totalorder %s992_s7, %s987_s6 }
  0x35   : > { %p996_p9 = scmp.lt.u32.totalorder %s987_s6, %s1212_s5 }
  0x36   : > { %p990_p13 = pnand %p989_p12, %p988_p6  ;;  %p995_p8 = por %p994_p3, %p993_p7 }
  0x38   : > { %p991_p1 = pneg %p990_p13  ;;  %p997_p10 = por %p996_p9, %p995_p8 }
  0x3a   : > { %p998_p2 = pnand %p997_p10, %p991_p1 }
  0x3c   : > { %1001 = shalt.err (!%p998_p2)
}
  0x3d   : > { %s1002_s27 = scalar_lea.vmem %s1214_s30, 4096  ;;  %s1090_s16 = smov [#allocation2]  }
  0x3e   : > { %p1003_p4 = scmp.ne.s32.totalorder %s1214_s30, %s1002_s27  ;;  %s1007_s17 = sshll.u32 %s1090_s16, 4  ;;  %s1008_s17 = int_to_ptr.vmem [resolvable:$false] %s1007_s17 }
  0x3f   : > { %s1009_s19 = scalar_lea.vmem %s1008_s17, 8192  ;;  %p1010_p6 = scmp.lt.s32.totalorder %s1214_s30, %s1008_s17 }
  0x40   : > { %p1005_p5 = pnand %p1003_p4, %p989_p12  ;;  %p1011_p13 = scmp.lt.s32.totalorder %s1009_s19, %s1002_s27 }
  0x42   : > { %p1006_p0 = pneg %p1005_p5  ;;  %p1012_p7 = por %p1011_p13, %p1010_p6 }
  0x44   : > { %p1013_p3 = pnand %p1012_p7, %p1006_p0 }
  0x46   : > { %1016 = shalt.err (!%p1013_p3)
}
  0x47   : > { %s1091_s24 = smov 256   ;;  %s1092_s3 = smov 16  }
  0x48   : > { %909 = dma.hbm_to_vmem [thread:$0]  (!%p1975_p11), %s1212_s5, 4096, %s1214_s30, %s1216_s26, %s1091_s24, %s1091_s24, %s1092_s3  }
  0x49   : > { %p1976_p12 = scmp.ne.s32.totalorder %s1971_s23, 0 }
  0x4b   : > { %144 = sbr.rel (%p1976_p12) target bundleno = 485 (0x1e5), region = 28 }
  0x52   : > { %s1247_s4 = sand.u32 1, %s1079_s10   ;;  %p1977_p1 = scmp.ne.s32.totalorder %s1968_s20, 0 }
  0x53   : > { %s883_s6 = sshll.u32 %s1247_s4, 8  ;;  %s147_s25 = scalar_lea.sflag [#allocation3], %s1247_s4 }
  0x54   : > { %s1253_s29 = scalar_lea.vmem [#allocation2], %s883_s6 }
  0x55   : > { %1062 = dma.done.wait (%p1977_p1), %s147_s25, 4096  }
  0x56   : > { %1064 = vsyncadd (%p1977_p1), %s147_s25, 4294963200  ;;  %p1978_p11 = scmp.eq.s32.totalorder %s1132_s13, 0 }
  0x58   : > { %1066 = dma.done.wait (%p1978_p11), [#allocation6], 64   ;;  %p1979_p8 = pmov %p1978_p11 }
  0x59   : > { %v1264_v0 = vld [vmem:[%s1253_s29] sm:$0xff]  ;;  %v1267_v1 = vld [vmem:[%s1253_s29 + $0x8] sm:$0xff]  ;;  %v1278_v5 = vld [vmem:[%s1253_s29 + $0x10] sm:$0xff]  ;;  %v288_v48 = vlaneseq  ;;  %vm300_vm0 = vcmask 138312   ;;  %vm414_vm1 = vcmask 130112   ;;  %vm530_vm2 = vcmask 121912  }
  0x5a   : > { %1068 = vsyncadd (%p1979_p8), [#allocation6], 4294967232  ;;  %v1270_v2 = vld [vmem:[%s1253_s29 + $0x20] sm:$0xff]  ;;  %v207_v3 = vadd.f32 %v1267_v1, %v1264_v0  ;;  %v1275_v4 = vld [vmem:[%s1253_s29 + $0x28] sm:$0xff]  ;;  %vm307_vm3 = vcmask 203912   ;;  %vm421_vm4 = vcmask 195712  }
  0x5b   : > { %1980 = vst [vmem:[#allocation11_spill] sm:$0xff] %v1270_v2  ;;  %1981 = vst [vmem:[#allocation12_spill] sm:$0xff] %v1275_v4  ;;  %v1281_v6 = vld [vmem:[%s1253_s29 + $0x18] sm:$0xff]  ;;  %v213_v7 = vadd.f32 %v1275_v4, %v1270_v2  ;;  %v1286_v8 = vld [vmem:[%s1253_s29 + $0x30] sm:$0xff]  ;;  %v1391_v49 = vand.u32 127, %v288_v48  ;;  %v1396_v51 = vshrl.u32 %v288_v48, 7 }
  0x5c   : > { %1982 = vst [vmem:[#allocation13_spill] sm:$0xff] %v1286_v8  ;;  %v1289_v9 = vld [vmem:[%s1253_s29 + $0x38] sm:$0xff]  ;;  %208 = vadd.xlane.f32.xlu0 %v207_v3  ;;  %v210_v10 = vadd.f32 %v1281_v6, %v1278_v5  ;;  %v1296_v12 = vld [vmem:[%s1253_s29 + $0x40] sm:$0xff]  ;;  %v1299_v13 = vld [vmem:[%s1253_s29 + $0x48] sm:$0xff]  ;;  %vm537_vm5 = vcmask 187512   ;;  %vm314_vm6 = vcmask 269512  }
  0x5d   : > { %1983 = vst [vmem:[#allocation14_spill] sm:$0xff] %v1289_v9  ;;  %214 = vadd.xlane.f32.xlu1 %v213_v7  ;;  %v216_v11 = vadd.f32 %v1289_v9, %v1286_v8  ;;  %1984 = vst [vmem:[#allocation15_spill] sm:$0xff] %v1296_v12  ;;  %v1302_v14 = vld [vmem:[%s1253_s29 + $0x50] sm:$0xff]  ;;  %v1305_v15 = vld [vmem:[%s1253_s29 + $0x58] sm:$0xff]  ;;  %v219_v16 = vadd.f32 %v1299_v13, %v1296_v12  ;;  %v1394_v50 = vadd.s32 4294967295, %v1391_v49  ;;  %v1399_v52 = vadd.s32 1, %v1391_v49 }
  0x5e   : > { %1985 = vst [vmem:[#allocation16_spill] sm:$0xff] %v1299_v13  ;;  %1986 = vst [vmem:[#allocation17_spill] sm:$0xff] %v1302_v14  ;;  %v222_v17 = vadd.f32 %v1305_v15, %v1302_v14  ;;  %v1312_v18 = vld [vmem:[%s1253_s29 + $0x60] sm:$0xff]  ;;  %v1315_v19 = vld [vmem:[%s1253_s29 + $0x68] sm:$0xff]  ;;  %v1402_v53 = vadd.s32 4294967279, %v1391_v49  ;;  %v1405_v54 = vadd.s32 4294967280, %v1391_v49 }
  0x5f   : > { %1987 = vst [vmem:[#allocation18_spill] sm:$0xff] %v1305_v15  ;;  %1988 = vst [vmem:[#allocation19_spill] sm:$0xff] %v1312_v18  ;;  %v1318_v20 = vld [vmem:[%s1253_s29 + $0x70] sm:$0xff]  ;;  %v1321_v21 = vld [vmem:[%s1253_s29 + $0x78] sm:$0xff]  ;;  %v225_v22 = vadd.f32 %v1315_v19, %v1312_v18  ;;  %v1408_v55 = vadd.s32 4294967281, %v1391_v49  ;;  %v1411_v56 = vadd.s32 4294967287, %v1391_v49 }
  0x60   : > { %211 = vadd.xlane.f32.xlu0 %v210_v10  ;;  %1989 = vst [vmem:[#allocation20_spill] sm:$0xff] %v1315_v19  ;;  %1990 = vst [vmem:[#allocation21_spill] sm:$0xff] %v1318_v20  ;;  %v228_v23 = vadd.f32 %v1321_v21, %v1318_v20  ;;  %v1328_v24 = vld [vmem:[%s1253_s29 + $0x80] sm:$0xff]  ;;  %v1331_v25 = vld [vmem:[%s1253_s29 + $0x88] sm:$0xff]  ;;  %v1414_v57 = vadd.s32 4294967288, %v1391_v49  ;;  %v1417_v58 = vadd.s32 4294967289, %v1391_v49  ;;  %v2009_v19 = vsub.s32 %v1391_v49, %v1396_v51 }
  0x61   : > { %217 = vadd.xlane.f32.xlu1 %v216_v11  ;;  %1991 = vst [vmem:[#allocation22_spill] sm:$0xff] %v1321_v21  ;;  %1992 = vst [vmem:[#allocation23_spill] sm:$0xff] %v1328_v24  ;;  %v1334_v26 = vld [vmem:[%s1253_s29 + $0x90] sm:$0xff]  ;;  %v1337_v27 = vld [vmem:[%s1253_s29 + $0x98] sm:$0xff]  ;;  %v231_v28 = vadd.f32 %v1331_v25, %v1328_v24  ;;  %v1420_v59 = vadd.s32 4294967271, %v1391_v49  ;;  %v1423_v60 = vadd.s32 4294967272, %v1391_v49  ;;  %v2010_v20 = vsub.s32 %v1399_v52, %v1396_v51 }
  0x62   : > { %1993 = vst [vmem:[#allocation24_spill] sm:$0xff] %v1331_v25  ;;  %1994 = vst [vmem:[#allocation25_spill] sm:$0xff] %v1334_v26  ;;  %v234_v29 = vadd.f32 %v1337_v27, %v1334_v26  ;;  %v1344_v30 = vld [vmem:[%s1253_s29 + $0xa0] sm:$0xff]  ;;  %v1347_v31 = vld [vmem:[%s1253_s29 + $0xa8] sm:$0xff]  ;;  %v1426_v61 = vadd.s32 4294967273, %v1391_v49  ;;  %v1429_v62 = vadd.s32 4294967263, %v1391_v49  ;;  %v2012_v13 = vsub.s32 %v1405_v54, %v1396_v51 }
  0x63   : > { %1995 = vst [vmem:[#allocation26_spill] sm:$0xff] %v1337_v27  ;;  %1996 = vst [vmem:[#allocation27_spill] sm:$0xff] %v1344_v30  ;;  %v1350_v32 = vld [vmem:[%s1253_s29 + $0xb0] sm:$0xff]  ;;  %v1353_v33 = vld [vmem:[%s1253_s29 + $0xb8] sm:$0xff]  ;;  %v237_v34 = vadd.f32 %v1347_v31, %v1344_v30  ;;  %v1438_v10 = vadd.s32 4294967264, %v1391_v49  ;;  %v1469_v48 = vadd.s32 4294967256, %v1391_v49  ;;  %v2013_v2 = vsub.s32 %v1411_v56, %v1396_v51 }
  0x64   : > { %220 = vadd.xlane.f32.xlu0 %v219_v16  ;;  %1997 = vst [vmem:[#allocation28_spill] sm:$0xff] %v1347_v31  ;;  %1998 = vst [vmem:[#allocation29_spill] sm:$0xff] %v1350_v32  ;;  %v240_v35 = vadd.f32 %v1353_v33, %v1350_v32  ;;  %v1360_v36 = vld [vmem:[%s1253_s29 + $0xc0] sm:$0xff]  ;;  %v1363_v37 = vld [vmem:[%s1253_s29 + $0xc8] sm:$0xff]  ;;  %v1499_v16 = vadd.s32 4294967233, %v1391_v49  ;;  %v1506_v3 = vadd.s32 4294967223, %v1391_v49  ;;  %v2014_v52 = vsub.s32 %v1414_v57, %v1396_v51 }
  0x65   : > { %223 = vadd.xlane.f32.xlu1 %v222_v17  ;;  %1999 = vst [vmem:[#allocation30_spill] sm:$0xff] %v1353_v33  ;;  %2000 = vst [vmem:[#allocation31_spill] sm:$0xff] %v1360_v36  ;;  %v1366_v38 = vld [vmem:[%s1253_s29 + $0xd0] sm:$0xff]  ;;  %v1369_v39 = vld [vmem:[%s1253_s29 + $0xd8] sm:$0xff]  ;;  %v243_v40 = vadd.f32 %v1363_v37, %v1360_v36  ;;  %v1484_v17 = vadd.s32 4294967239, %v1391_v49  ;;  %v1509_v63 = vadd.s32 4294967224, %v1391_v49  ;;  %v2019_v57 = vsub.s32 %v1426_v61, %v1396_v51 }
  0x66   : > { %2001 = vst [vmem:[#allocation32_spill] sm:$0xff] %v1363_v37  ;;  %2002 = vst [vmem:[#allocation33_spill] sm:$0xff] %v1366_v38  ;;  %v246_v41 = vadd.f32 %v1369_v39, %v1366_v38  ;;  %v1376_v42 = vld [vmem:[%s1253_s29 + $0xe0] sm:$0xff]  ;;  %v1379_v43 = vld [vmem:[%s1253_s29 + $0xe8] sm:$0xff]  ;;  %v1518_v11 = vadd.s32 4294967225, %v1391_v49  ;;  %v1549_v7 = vadd.s32 4294967217, %v1391_v49 }
  0x67   : > { %2003 = vst [vmem:[#allocation34_spill] sm:$0xff] %v1369_v39  ;;  %2004 = vst [vmem:[#allocation35_spill] sm:$0xff] %v1376_v42  ;;  %v1382_v44 = vld [vmem:[%s1253_s29 + $0xf0] sm:$0xff]  ;;  %v1385_v45 = vld [vmem:[%s1253_s29 + $0xf8] sm:$0xff]  ;;  %v249_v46 = vadd.f32 %v1379_v43, %v1376_v42  ;;  %v1552_v38 = vadd.s32 4294967207, %v1391_v49  ;;  %v1558_v39 = vadd.s32 4294967209, %v1391_v49 }
  0x68   : > { %226 = vadd.xlane.f32.xlu0 %v225_v22  ;;  %2005 = vst [vmem:[#allocation36_spill] sm:$0xff] %v1379_v43  ;;  %2006 = vst [vmem:[#allocation37_spill] sm:$0xff] %v1382_v44  ;;  %v252_v47 = vadd.f32 %v1385_v45, %v1382_v44  ;;  %v1496_v22 = vadd.s32 4294967232, %v1391_v49  ;;  %v1544_v44 = vadd.s32 4294967216, %v1391_v49  ;;  %v1555_v43 = vadd.s32 4294967208, %v1391_v49  ;;  %s1818_s20 = scalar_lea.vmem [#allocation7], %s883_s6 }
  0x69   : > { %229 = vadd.xlane.f32.xlu1 %v228_v23  ;;  %2007 = vst [vmem:[#allocation38_spill] sm:$0xff] %v1385_v45  ;;  %v1493_v23 = vadd.s32 4294967231, %v1391_v49  ;;  %v1541_v45 = vadd.s32 4294967215, %v1391_v49  ;;  %v1561_v33 = vadd.s32 4294967199, %v1391_v49  ;;  %v1564_v42 = vadd.s32 4294967200, %v1391_v49  ;;  %s893_s23 = sshll.u32 %s1132_s13, 12 }
  0x6a   : > { %v1567_v32 = vadd.s32 4294967201, %v1391_v49  ;;  %vm428_vm7 = vcmask 261312   ;;  %vm544_vm8 = vcmask 253112   ;;  %v1570_v36 = vadd.s32 4294967191, %v1391_v49  ;;  %s792_s28 = sshll.u32 %s1818_s20, 4  ;;  %s1881_s26 = scalar_lea.hbm %s1933_s2, %s893_s23  ;;  %s1883_s28 = int_to_ptr.vmem [resolvable:$true] %s792_s28 }
  0x6b   : > { %v1573_v27 = vadd.s32 4294967192, %v1391_v49  ;;  %v1576_v26 = vadd.s32 4294967193, %v1391_v49  ;;  %v1579_v31 = vadd.s32 4294967183, %v1391_v49  ;;  %v1586_v24 = vadd.s32 4294967184, %v1391_v49  ;;  %s779_s13 = scalar_lea.sflag [#allocation4], %s1247_s4  ;;  %s1017_s7 = scalar_lea.vmem %s1883_s28, 4096 }
  0x6c   : > { %232 = vadd.xlane.f32.xlu0 %v231_v28  ;;  %v1490_v28 = vadd.s32 4294967241, %v1391_v49  ;;  %vm321_vm9 = vcmask 335112   ;;  %vm435_vm10 = vcmask 326912   ;;  %vm456_vm13 = vcmask 523712   ;;  %p1018_p9 = scmp.ne.s32.totalorder %s1883_s28, %s1017_s7  ;;  %p2096_p10 = scmp.ne.s32.totalorder %s1969_s21, 0 }
  0x6d   : > { %235 = vadd.xlane.f32.xlu1 %v234_v29  ;;  %v1481_v29 = vadd.s32 4294967249, %v1391_v49  ;;  %vm572_vm14 = vcmask 515512   ;;  %vm349_vm12 = vcmask 597512   ;;  %vm463_vm15 = vcmask 589312   ;;  %s1093_s8 = smov [#allocation7]  }
  0x6e   : > { %vm579_vm11 = vcmask 581112   ;;  %p1019_p2 = pnand %p1018_p9, %p2096_p10  ;;  %s1021_s14 = sshll.u32 %s1093_s8, 4  ;;  %s1022_s14 = int_to_ptr.vmem [resolvable:$false] %s1021_s14 }
  0x6f   : > { %s1023_s27 = scalar_lea.vmem %s1022_s14, 8192  ;;  %p1024_p5 = scmp.lt.s32.totalorder %s1883_s28, %s1022_s14 }
  0x70   : > { %238 = vadd.xlane.f32.xlu0 %v237_v34  ;;  %v1472_v34 = vadd.s32 4294967257, %v1391_v49  ;;  %p1020_p4 = pneg %p1019_p2  ;;  %p1025_p0 = scmp.lt.s32.totalorder %s1023_s27, %s1017_s7 }
  0x71   : > { %241 = vadd.xlane.f32.xlu1 %v240_v35  ;;  %v1475_v35 = vadd.s32 4294967247, %v1391_v49 }
  0x72   : > { %p1026_p6 = por %p1025_p0, %p1024_p5 }
  0x74   : > { %244 = vadd.xlane.f32.xlu0 %v243_v40  ;;  %v1478_v40 = vadd.s32 4294967248, %v1391_v49  ;;  %p1027_p13 = pnand %p1026_p6, %p1020_p4 }
  0x75   : > { %247 = vadd.xlane.f32.xlu1 %v246_v41  ;;  %v1461_v41 = vadd.s32 4294967265, %v1391_v49 }
  0x78   : > { %250 = vadd.xlane.f32.xlu0 %v249_v46  ;;  %v1464_v46 = vadd.s32 4294967255, %v1391_v49 }
  0x79   : > { %253 = vadd.xlane.f32.xlu1 %v252_v47  ;;  %v1487_v47 = vadd.s32 4294967240, %v1391_v49 }
  0xe9   : > { %v209_v37 = vpop.xlane.xlu0 %208 }
  0xea   : > { %v255_v30 = vmul.f32 0.00390625, %v209_v37  ;;  %v215_v21 = vpop.xlane.xlu1 %214  ;;  %v1616_v37 = vadd.s32 4294967185, %v1391_v49 }
  0xeb   : > { %v257_v15 = vmul.f32 0.00390625, %v215_v21  ;;  %v2008_v21 = vsub.s32 %v1394_v50, %v1396_v51  ;;  %v2011_v50 = vsub.s32 %v1402_v53, %v1396_v51 }
  0xec   : > { %v408_v12 = vrot.slane %v255_v30, %v2009_v19  ;;  %v524_v25 = vrot.slane %v255_v30, %v2010_v20 }
  0xed   : > { %v212_v18 = vpop.xlane.xlu0 %211  ;;  %v294_v9 = vrot.slane %v255_v30, %v2008_v21  ;;  %v306_v21 = vrot.slane %v257_v15, %v2011_v50  ;;  %v420_v4 = vrot.slane %v257_v15, %v2012_v13  ;;  %v2015_v30 = vsub.s32 %v1417_v58, %v1396_v51 }
  0xee   : > { %v256_v14 = vmul.f32 0.00390625, %v212_v18  ;;  %v218_v8 = vpop.xlane.xlu1 %217  ;;  %v2017_v13 = vsub.s32 %v1420_v59, %v1396_v51 }
  0xef   : > { %v258_v18 = vmul.f32 0.00390625, %v218_v8  ;;  %v2016_v8 = vsub.s32 %v1408_v55, %v1396_v51 }
  0xf0   : > { %v299_v19 = vrot.slane %v256_v14, %v2013_v2  ;;  %v413_v20 = vrot.slane %v256_v14, %v2014_v52  ;;  %v529_v53 = vrot.slane %v256_v14, %v2015_v30  ;;  %v2018_v2 = vsub.s32 %v1423_v60, %v1396_v51 }
  0xf1   : > { %v536_v50 = vrot.slane %v257_v15, %v2016_v8  ;;  %v313_v54 = vrot.slane %v258_v18, %v2017_v13  ;;  %v543_v52 = vrot.slane %v258_v18, %v2019_v57  ;;  %v221_v58 = vpop.xlane.xlu0 %220 }
  0xf2   : > { %v427_v56 = vrot.slane %v258_v18, %v2018_v2  ;;  %v301_v14 = vsel %vm300_vm0, %v299_v19, %v294_v9  ;;  %v415_v30 = vsel %vm414_vm1, %v413_v20, %v408_v12  ;;  %v531_v15 = vsel %vm530_vm2, %v529_v53, %v524_v25  ;;  %v224_v8 = vpop.xlane.xlu1 %223 }
  0xf3   : > { %v259_v55 = vmul.f32 0.00390625, %v221_v58  ;;  %v308_v59 = vsel %vm307_vm3, %v306_v21, %v301_v14  ;;  %v422_v60 = vsel %vm421_vm4, %v420_v4, %v415_v30  ;;  %v538_v13 = vsel %vm537_vm5, %v536_v50, %v531_v15 }
  0xf4   : > { %v260_v2 = vmul.f32 0.00390625, %v224_v8  ;;  %v315_v61 = vsel %vm314_vm6, %v313_v54, %v308_v59  ;;  %v429_v9 = vsel %vm428_vm7, %v427_v56, %v422_v60  ;;  %v545_v12 = vsel %vm544_vm8, %v543_v52, %v538_v13 }
  0xf5   : > { %v2020_v25 = vsub.s32 %v1429_v62, %v1396_v51  ;;  %vm356_vm0 = vcmask 663112   ;;  %v2021_v4 = vsub.s32 %v1438_v10, %v1396_v51  ;;  %v2022_v19 = vsub.s32 %v1461_v41, %v1396_v51  ;;  %v227_v57 = vpop.xlane.xlu0 %226 }
  0xf6   : > { %v2023_v53 = vsub.s32 %v1464_v46, %v1396_v51  ;;  %v2024_v54 = vsub.s32 %v1469_v48, %v1396_v51  ;;  %v2025_v10 = vsub.s32 %v1472_v34, %v1396_v51  ;;  %v261_v58 = vmul.f32 0.00390625, %v227_v57  ;;  %v230_v14 = vpop.xlane.xlu1 %229 }
  0xf7   : > { %v320_v18 = vrot.slane %v259_v55, %v2020_v25  ;;  %v434_v21 = vrot.slane %v259_v55, %v2021_v4  ;;  %v550_v20 = vrot.slane %v259_v55, %v2022_v19  ;;  %v1680_v41 = vadd.s32 4294967175, %v1391_v49 }
  0xf8   : > { %v327_v50 = vrot.slane %v260_v2, %v2023_v53  ;;  %v441_v56 = vrot.slane %v260_v2, %v2024_v54  ;;  %v557_v52 = vrot.slane %v260_v2, %v2025_v10  ;;  %vm2026_vm3 = vcmask 318712  }
  0xf9   : > { %v322_v62 = vsel %vm321_vm9, %v320_v18, %v315_v61  ;;  %v436_v46 = vsel %vm435_vm10, %v434_v21, %v429_v9  ;;  %v552_v30 = vsel %vm2026_vm3, %v550_v20, %v545_v12  ;;  %v262_v48 = vmul.f32 0.00390625, %v230_v14  ;;  %v233_v21 = vpop.xlane.xlu0 %232 }
  0xfa   : > { %v619_v15 = vsub.s32 %v1616_v37, %v1396_v51  ;;  %vm2027_vm7 = vcmask 400712   ;;  %vm2028_vm8 = vcmask 392512   ;;  %v2029_v8 = vsub.s32 %v1475_v35, %v1396_v51  ;;  %v236_v53 = vpop.xlane.xlu1 %235 }
  0xfb   : > { %v329_v34 = vsel %vm2027_vm7, %v327_v50, %v322_v62  ;;  %v443_v55 = vsel %vm2028_vm8, %v441_v56, %v436_v46  ;;  %v2030_v60 = vsub.s32 %v1478_v40, %v1396_v51  ;;  %v2031_v2 = vsub.s32 %v1481_v29, %v1396_v51 }
  0xfc   : > { %v334_v59 = vrot.slane %v261_v58, %v2029_v8  ;;  %v2032_v9 = vsub.s32 %v1484_v17, %v1396_v51  ;;  %v2033_v25 = vsub.s32 %v1487_v47, %v1396_v51  ;;  %v2034_v35 = vsub.s32 %v1490_v28, %v1396_v51 }
  0xfd   : > { %v448_v13 = vrot.slane %v261_v58, %v2030_v60  ;;  %v564_v61 = vrot.slane %v261_v58, %v2031_v2  ;;  %vm484_vm10 = vcmask 786112   ;;  %vm2035_vm3 = vcmask 384312  }
  0xfe   : > { %v341_v12 = vrot.slane %v262_v48, %v2032_v9  ;;  %v455_v18 = vrot.slane %v262_v48, %v2033_v25  ;;  %v571_v4 = vrot.slane %v262_v48, %v2034_v35  ;;  %v559_v40 = vsel %vm2035_vm3, %v557_v52, %v552_v30 }
  0xff   : > { %vm2036_vm7 = vcmask 466312   ;;  %vm2037_vm8 = vcmask 458112   ;;  %v263_v20 = vmul.f32 0.00390625, %v233_v21  ;;  %vm600_vm9 = vcmask 777912  }
 0x100   : > { %v336_v19 = vsel %vm2036_vm7, %v334_v59, %v329_v34  ;;  %v450_v29 = vsel %vm2037_vm8, %v448_v13, %v443_v55  ;;  %vm2038_vm6 = vcmask 449912   ;;  %vm2039_vm5 = vcmask 531912   ;;  %v239_v55 = vpop.xlane.xlu0 %238  ;;  %v242_v13 = vpop.xlane.xlu1 %241 }
 0x101   : > { %v566_v17 = vsel %vm2038_vm6, %v564_v61, %v559_v40  ;;  %v343_v47 = vsel %vm2039_vm5, %v341_v12, %v336_v19  ;;  %v264_v50 = vmul.f32 0.00390625, %v236_v53  ;;  %vm377_vm4 = vcmask 859912  }
 0x102   : > { %vm491_vm2 = vcmask 851712   ;;  %vm607_vm1 = vcmask 843512   ;;  %v1712_v28 = vadd.s32 4294967176, %v1391_v49  ;;  %v457_v54 = vsel %vm456_vm13, %v455_v18, %v450_v29 }
 0x103   : > { %v2040_v56 = vsub.s32 %v1493_v23, %v1396_v51  ;;  %v2041_v62 = vsub.s32 %v1496_v22, %v1396_v51  ;;  %v2042_v52 = vsub.s32 %v1499_v16, %v1396_v51  ;;  %vm384_vm5 = vcmask 925512  }
 0x104   : > { %v573_v14 = vsel %vm572_vm14, %v571_v4, %v566_v17  ;;  %v2043_v46 = vsub.s32 %v1506_v3, %v1396_v51  ;;  %v2044_v48 = vsub.s32 %v1509_v63, %v1396_v51  ;;  %v2045_v34 = vsub.s32 %v1518_v11, %v1396_v51  ;;  %v245_v29 = vpop.xlane.xlu0 %244 }
 0x105   : > { %v348_v57 = vrot.slane %v263_v20, %v2040_v56  ;;  %v462_v10 = vrot.slane %v263_v20, %v2041_v62  ;;  %v578_v58 = vrot.slane %v263_v20, %v2042_v52  ;;  %vm498_vm13 = vcmask 917312  }
 0x106   : > { %v355_v30 = vrot.slane %v264_v50, %v2043_v46  ;;  %v469_v23 = vrot.slane %v264_v50, %v2044_v48  ;;  %v585_v22 = vrot.slane %v264_v50, %v2045_v34  ;;  %v265_v60 = vmul.f32 0.00390625, %v239_v55 }
 0x107   : > { %v350_v16 = vsel %vm349_vm12, %v348_v57, %v343_v47  ;;  %v464_v8 = vsel %vm463_vm15, %v462_v10, %v457_v54  ;;  %v580_v59 = vsel %vm579_vm11, %v578_v58, %v573_v14  ;;  %vm614_vm14 = vcmask 909112   ;;  %v248_v47 = vpop.xlane.xlu1 %247 }
 0x108   : > { %v357_v3 = vsel %vm356_vm0, %v355_v30, %v350_v16  ;;  %v266_v2 = vmul.f32 0.00390625, %v242_v13  ;;  %vm391_vm6 = vcmask 991112   ;;  %vm505_vm3 = vcmask 982912  }
 0x109   : > { %vm621_vm7 = vcmask 974712   ;;  %v396_v63 = vsub.s32 %v1680_v41, %v1396_v51  ;;  %v623_v11 = vadd.s32 4294967177, %v1391_v49  ;;  %vm2046_vm8 = vcmask 654912  }
 0x10a   : > { %v471_v61 = vsel %vm2046_vm8, %v469_v23, %v464_v8  ;;  %v2047_v9 = vsub.s32 %v1541_v45, %v1396_v51  ;;  %v2048_v25 = vsub.s32 %v1544_v44, %v1396_v51  ;;  %v2049_v35 = vsub.s32 %v1549_v7, %v1396_v51 }
 0x10b   : > { %vm2050_vm15 = vcmask 646712   ;;  %v2051_v49 = vsub.s32 %v1552_v38, %v1396_v51  ;;  %v2052_v45 = vsub.s32 %v1555_v43, %v1396_v51  ;;  %v2053_v44 = vsub.s32 %v1558_v39, %v1396_v51  ;;  %v254_v16 = vpop.xlane.xlu1 %253 }
 0x10c   : > { %v362_v12 = vrot.slane %v265_v60, %v2047_v9  ;;  %v476_v18 = vrot.slane %v265_v60, %v2048_v25  ;;  %v592_v4 = vrot.slane %v265_v60, %v2049_v35  ;;  %v587_v41 = vsel %vm2050_vm15, %v585_v22, %v580_v59 }
 0x10d   : > { %v369_v21 = vrot.slane %v266_v2, %v2051_v49  ;;  %v483_v40 = vrot.slane %v266_v2, %v2052_v45  ;;  %v599_v19 = vrot.slane %v266_v2, %v2053_v44  ;;  %vm401_vm0 = vcmask 7168  }
 0x10e   : > { %vm2054_vm8 = vcmask 728712   ;;  %vm2055_vm11 = vcmask 720512   ;;  %vm2056_vm12 = vcmask 712312   ;;  %v267_v17 = vmul.f32 0.00390625, %v245_v29 }
 0x10f   : > { %v364_v7 = vsel %vm2054_vm8, %v362_v12, %v357_v3  ;;  %v478_v20 = vsel %vm2055_vm11, %v476_v18, %v471_v61  ;;  %v594_v53 = vsel %vm2056_vm12, %v592_v4, %v587_v41  ;;  %vm2057_vm15 = vcmask 794312  }
 0x110   : > { %v371_v38 = vsel %vm2057_vm15, %v369_v21, %v364_v7  ;;  %v268_v50 = vmul.f32 0.00390625, %v248_v47  ;;  %v510_v43 = vsub.s32 %v1712_v28, %v1396_v51  ;;  %v626_v54 = vsub.s32 %v623_v11, %v1396_v51  ;;  %v271_v11 = vld [vmem:[#allocation5] sm:$0x7] }
 0x111   : > { %v485_v39 = vsel %vm484_vm10, %v483_v40, %v478_v20  ;;  %v2058_v56 = vsub.s32 %v1561_v33, %v1396_v51  ;;  %v2059_v62 = vsub.s32 %v1564_v42, %v1396_v51  ;;  %v2060_v52 = vsub.s32 %v1567_v32, %v1396_v51  ;;  %v251_v42 = vpop.xlane.xlu0 %250 }
 0x112   : > { %v601_v14 = vsel %vm600_vm9, %v599_v19, %v594_v53  ;;  %v2061_v28 = vsub.s32 %v1570_v36, %v1396_v51  ;;  %v2062_v30 = vsub.s32 %v1573_v27, %v1396_v51  ;;  %v2063_v33 = vsub.s32 %v1576_v26, %v1396_v51 }
 0x113   : > { %v376_v57 = vrot.slane %v267_v17, %v2058_v56  ;;  %v490_v10 = vrot.slane %v267_v17, %v2059_v62  ;;  %v606_v58 = vrot.slane %v267_v17, %v2060_v52  ;;  %v269_v55 = vmul.f32 0.00390625, %v251_v42  ;;  %v2069_v56 = vld [vmem:[#allocation12_spill] sm:$0xff]  ;;  %v2070_v62 = vld [vmem:[#allocation15_spill] sm:$0xff] }
 0x114   : > { %v383_v46 = vrot.slane %v268_v50, %v2061_v28  ;;  %v497_v48 = vrot.slane %v268_v50, %v2062_v30  ;;  %v613_v23 = vrot.slane %v268_v50, %v2063_v33  ;;  %vm628_vm9 = vcmask 1040312   ;;  %v2071_v52 = vld [vmem:[#allocation16_spill] sm:$0xff] }
 0x115   : > { %v378_v34 = vsel %vm377_vm4, %v376_v57, %v371_v38  ;;  %v492_v32 = vsel %vm491_vm2, %v490_v10, %v485_v39  ;;  %v608_v22 = vsel %vm607_vm1, %v606_v58, %v601_v14  ;;  %vm631_vm10 = vcmask 1039360  }
 0x116   : > { %v385_v36 = vsel %vm384_vm5, %v383_v46, %v378_v34  ;;  %v270_v8 = vmul.f32 0.00390625, %v254_v16  ;;  %v499_v27 = vsel %vm498_vm13, %v497_v48, %v492_v32  ;;  %v2064_v26 = vsub.s32 %v1579_v31, %v1396_v51  ;;  %v2072_v46 = vld [vmem:[#allocation13_spill] sm:$0xff]  ;;  %v2073_v48 = vld [vmem:[#allocation14_spill] sm:$0xff]  ;;  %v2075_v34 = vld [vmem:[#allocation20_spill] sm:$0xff] }
 0x117   : > { %v2065_v60 = vsub.s32 %v1586_v24, %v1396_v51  ;;  %v620_v3 = vrot.slane %v269_v55, %v619_v15  ;;  %v615_v2 = vsel %vm614_vm14, %v613_v23, %v608_v22  ;;  %vm2066_vm1 = vcmask 1048520   ;;  %v2074_v23 = vld [vmem:[#allocation19_spill] sm:$0xff]  ;;  %v2076_v16 = vld [vmem:[#allocation17_spill] sm:$0xff] }
 0x118   : > { %v390_v59 = vrot.slane %v269_v55, %v2064_v26  ;;  %v397_v61 = vrot.slane %v270_v8, %v396_v63  ;;  %v511_v9 = vrot.slane %v270_v8, %v510_v43  ;;  %v627_v12 = vrot.slane %v270_v8, %v626_v54  ;;  %v2077_v8 = vld [vmem:[#allocation18_spill] sm:$0xff]  ;;  %v2078_v26 = vld [vmem:[#allocation23_spill] sm:$0xff] }
 0x119   : > { %v504_v13 = vrot.slane %v269_v55, %v2065_v60  ;;  %v622_v31 = vsel %vm621_vm7, %v620_v3, %v615_v2  ;;  %vm2067_vm2 = vcmask 1048512   ;;  %v649_v53 = vsub.s32 0, %v1396_v51  ;;  %v2079_v60 = vld [vmem:[#allocation24_spill] sm:$0xff] }
 0x11a   : > { %v392_v25 = vsel %vm391_vm6, %v390_v59, %v385_v36  ;;  %v629_v4 = vsel %vm628_vm9, %v627_v12, %v622_v31  ;;  %v2083_v31 = vld [vmem:[#allocation28_spill] sm:$0xff] }
 0x11b   : > { %v506_v18 = vsel %vm505_vm3, %v504_v13, %v499_v27  ;;  %v399_v35 = vsel %vm2066_vm1, %v397_v61, %v392_v25  ;;  %v632_v41 = vsel %vm631_vm10, %v629_v4, 0.0  ;;  %v2082_v25 = vld [vmem:[#allocation27_spill] sm:$0xff] }
 0x11c   : > { %v513_v24 = vsel %vm2067_vm2, %v511_v9, %v506_v18  ;;  %v402_v37 = vsel %vm401_vm0, 0.0, %v399_v35  ;;  %v634_v49 = vrot.slane %v632_v41, 7  ;;  %v2081_v9 = vld [vmem:[#allocation22_spill] sm:$0xff] }
 0x11d   : > { %v515_v15 = vmul.f32 %v513_v24, %v271_v11  ;;  %v403_v63 = vmul.f32 %v402_v37, %v271_v11  ;;  %v2084_v37 = vld [vmem:[#allocation25_spill] sm:$0xff]  ;;  %v2085_v41 = vld [vmem:[#allocation26_spill] sm:$0xff] }
 0x11e   : > { %v636_v45 = vmul.f32 %v634_v49, %v271_v11  ;;  %v2080_v11 = vld [vmem:[#allocation21_spill] sm:$0xff]  ;;  %v2086_v49 = vld [vmem:[#allocation31_spill] sm:$0xff] }
 0x11f   : > { %v517_v21 = vrot.slane %v515_v15, 1 }
 0x120   : > { %v638_v44 = vrot.slane %v636_v45, 2  ;;  %v2087_v45 = vld [vmem:[#allocation32_spill] sm:$0xff] }
 0x121   : > { %v519_v40 = vadd.f32 %v517_v21, %v403_v63 }
 0x123   : > { %v640_v19 = vadd.f32 %v638_v44, %v519_v40 }
 0x125   : > { %v886_v29 = vmul.f32 -1.442695, %v640_v19 }
 0x127   : > { %955 = vpow2.f32 %v886_v29  ;;  %v2088_v29 = vld [vmem:[#allocation29_spill] sm:$0xff] }
 0x131   : > { %v956_v7 = vpop.eup %955 }
 0x132   : > { %v644_v20 = vadd.f32 1.0, %v956_v7 }
 0x134   : > { %957 = vrcp.f32 %v644_v20  ;;  %v2089_v20 = vld [vmem:[#allocation30_spill] sm:$0xff] }
 0x13e   : > { %v958_v17 = vpop.eup %957 }
 0x13f   : > { %v650_v47 = vrot.slane %v958_v17, %v649_v53  ;;  %v2090_v17 = vld [vmem:[#allocation35_spill] sm:$0xff] }
 0x141   : > { %656 = vbcast.lane.b32.xlu1 %v650_v47, 264  ;;  %652 = vbcast.lane.b32.xlu0 %v650_v47, 256 }
 0x145   : > { %660 = vbcast.lane.b32.xlu1 %v650_v47, 272  ;;  %668 = vbcast.lane.b32.xlu0 %v650_v47, 288 }
 0x149   : > { %664 = vbcast.lane.b32.xlu1 %v650_v47, 280  ;;  %676 = vbcast.lane.b32.xlu0 %v650_v47, 304 }
 0x14d   : > { %672 = vbcast.lane.b32.xlu1 %v650_v47, 296  ;;  %684 = vbcast.lane.b32.xlu0 %v650_v47, 320 }
 0x151   : > { %680 = vbcast.lane.b32.xlu1 %v650_v47, 312  ;;  %692 = vbcast.lane.b32.xlu0 %v650_v47, 336 }
 0x155   : > { %688 = vbcast.lane.b32.xlu1 %v650_v47, 328  ;;  %700 = vbcast.lane.b32.xlu0 %v650_v47, 352 }
 0x159   : > { %696 = vbcast.lane.b32.xlu1 %v650_v47, 344  ;;  %708 = vbcast.lane.b32.xlu0 %v650_v47, 368 }
 0x15d   : > { %704 = vbcast.lane.b32.xlu1 %v650_v47, 360 }
 0x161   : > { %712 = vbcast.lane.b32.xlu1 %v650_v47, 376 }
 0x1b3   : > { %v657_v51 = vpop.permute.xlu1 %656  ;;  %v653_v38 = vpop.permute.xlu0 %652 }
 0x1b4   : > { %v716_v50 = vmul.f32 %v657_v51, %v1278_v5  ;;  %v717_v43 = vmul.f32 %v657_v51, %v1281_v6  ;;  %v714_v54 = vmul.f32 %v653_v38, %v1264_v0  ;;  %v715_v39 = vmul.f32 %v653_v38, %v1267_v1  ;;  %v2068_v6 = vld [vmem:[#allocation11_spill] sm:$0xff]  ;;  %v2091_v51 = vld [vmem:[#allocation36_spill] sm:$0xff] }
 0x1b6   : > { %748 = vst [vmem:[%s1818_s20 + $0x10] sm:$0xff] %v716_v50  ;;  %749 = vst [vmem:[%s1818_s20 + $0x18] sm:$0xff] %v717_v43  ;;  %v2092_v43 = vld [vmem:[#allocation33_spill] sm:$0xff] }
 0x1b7   : > { %746 = vst [vmem:[%s1818_s20] sm:$0xff] %v714_v54  ;;  %747 = vst [vmem:[%s1818_s20 + $0x8] sm:$0xff] %v715_v39  ;;  %v661_v5 = vpop.permute.xlu1 %660  ;;  %v669_v0 = vpop.permute.xlu0 %668  ;;  %v2093_v39 = vld [vmem:[#allocation34_spill] sm:$0xff] }
 0x1b8   : > { %v718_v1 = vmul.f32 %v661_v5, %v2068_v6  ;;  %v719_v57 = vmul.f32 %v661_v5, %v2069_v56  ;;  %v722_v10 = vmul.f32 %v669_v0, %v2070_v62  ;;  %v723_v58 = vmul.f32 %v669_v0, %v2071_v52  ;;  %v2094_v6 = vld [vmem:[#allocation37_spill] sm:$0xff]  ;;  %v2095_v56 = vld [vmem:[#allocation38_spill] sm:$0xff] }
 0x1ba   : > { %750 = vst [vmem:[%s1818_s20 + $0x20] sm:$0xff] %v718_v1  ;;  %751 = vst [vmem:[%s1818_s20 + $0x28] sm:$0xff] %v719_v57 }
 0x1bb   : > { %754 = vst [vmem:[%s1818_s20 + $0x40] sm:$0xff] %v722_v10  ;;  %755 = vst [vmem:[%s1818_s20 + $0x48] sm:$0xff] %v723_v58  ;;  %v665_v14 = vpop.permute.xlu1 %664  ;;  %v677_v28 = vpop.permute.xlu0 %676 }
 0x1bc   : > { %v720_v30 = vmul.f32 %v665_v14, %v2072_v46  ;;  %v721_v33 = vmul.f32 %v665_v14, %v2073_v48  ;;  %v726_v42 = vmul.f32 %v677_v28, %v2074_v23  ;;  %v727_v32 = vmul.f32 %v677_v28, %v2075_v34 }
 0x1be   : > { %752 = vst [vmem:[%s1818_s20 + $0x30] sm:$0xff] %v720_v30  ;;  %753 = vst [vmem:[%s1818_s20 + $0x38] sm:$0xff] %v721_v33 }
 0x1bf   : > { %758 = vst [vmem:[%s1818_s20 + $0x60] sm:$0xff] %v726_v42  ;;  %759 = vst [vmem:[%s1818_s20 + $0x68] sm:$0xff] %v727_v32  ;;  %v673_v22 = vpop.permute.xlu1 %672  ;;  %v685_v55 = vpop.permute.xlu0 %684 }
 0x1c0   : > { %v724_v36 = vmul.f32 %v673_v22, %v2076_v16  ;;  %v725_v27 = vmul.f32 %v673_v22, %v2077_v8  ;;  %v730_v59 = vmul.f32 %v685_v55, %v2078_v26  ;;  %v731_v13 = vmul.f32 %v685_v55, %v2079_v60 }
 0x1c2   : > { %756 = vst [vmem:[%s1818_s20 + $0x50] sm:$0xff] %v724_v36  ;;  %757 = vst [vmem:[%s1818_s20 + $0x58] sm:$0xff] %v725_v27 }
 0x1c3   : > { %762 = vst [vmem:[%s1818_s20 + $0x80] sm:$0xff] %v730_v59  ;;  %763 = vst [vmem:[%s1818_s20 + $0x88] sm:$0xff] %v731_v13  ;;  %v681_v3 = vpop.permute.xlu1 %680  ;;  %v693_v2 = vpop.permute.xlu0 %692 }
 0x1c4   : > { %v728_v61 = vmul.f32 %v681_v3, %v2080_v11  ;;  %v729_v12 = vmul.f32 %v681_v3, %v2081_v9  ;;  %v734_v18 = vmul.f32 %v693_v2, %v2082_v25  ;;  %v735_v35 = vmul.f32 %v693_v2, %v2083_v31 }
 0x1c6   : > { %760 = vst [vmem:[%s1818_s20 + $0x70] sm:$0xff] %v728_v61  ;;  %761 = vst [vmem:[%s1818_s20 + $0x78] sm:$0xff] %v729_v12 }
 0x1c7   : > { %766 = vst [vmem:[%s1818_s20 + $0xa0] sm:$0xff] %v734_v18  ;;  %767 = vst [vmem:[%s1818_s20 + $0xa8] sm:$0xff] %v735_v35  ;;  %v689_v24 = vpop.permute.xlu1 %688  ;;  %v701_v4 = vpop.permute.xlu0 %700 }
 0x1c8   : > { %v732_v15 = vmul.f32 %v689_v24, %v2084_v37  ;;  %v733_v63 = vmul.f32 %v689_v24, %v2085_v41  ;;  %v738_v21 = vmul.f32 %v701_v4, %v2086_v49  ;;  %v739_v40 = vmul.f32 %v701_v4, %v2087_v45 }
 0x1ca   : > { %764 = vst [vmem:[%s1818_s20 + $0x90] sm:$0xff] %v732_v15  ;;  %765 = vst [vmem:[%s1818_s20 + $0x98] sm:$0xff] %v733_v63 }
 0x1cb   : > { %770 = vst [vmem:[%s1818_s20 + $0xc0] sm:$0xff] %v738_v21  ;;  %771 = vst [vmem:[%s1818_s20 + $0xc8] sm:$0xff] %v739_v40  ;;  %v697_v44 = vpop.permute.xlu1 %696  ;;  %v709_v19 = vpop.permute.xlu0 %708 }
 0x1cc   : > { %v736_v7 = vmul.f32 %v697_v44, %v2088_v29  ;;  %v737_v53 = vmul.f32 %v697_v44, %v2089_v20  ;;  %v742_v47 = vmul.f32 %v709_v19, %v2090_v17  ;;  %v743_v38 = vmul.f32 %v709_v19, %v2091_v51 }
 0x1ce   : > { %768 = vst [vmem:[%s1818_s20 + $0xb0] sm:$0xff] %v736_v7  ;;  %769 = vst [vmem:[%s1818_s20 + $0xb8] sm:$0xff] %v737_v53 }
 0x1cf   : > { %774 = vst [vmem:[%s1818_s20 + $0xe0] sm:$0xff] %v742_v47  ;;  %775 = vst [vmem:[%s1818_s20 + $0xe8] sm:$0xff] %v743_v38  ;;  %v705_v50 = vpop.permute.xlu1 %704 }
 0x1d0   : > { %v740_v54 = vmul.f32 %v705_v50, %v2092_v43  ;;  %v741_v5 = vmul.f32 %v705_v50, %v2093_v39 }
 0x1d2   : > { %772 = vst [vmem:[%s1818_s20 + $0xd0] sm:$0xff] %v740_v54  ;;  %773 = vst [vmem:[%s1818_s20 + $0xd8] sm:$0xff] %v741_v5 }
 0x1d3   : > { %v713_v0 = vpop.permute.xlu1 %712 }
 0x1d4   : > { %v744_v1 = vmul.f32 %v713_v0, %v2094_v6  ;;  %v745_v57 = vmul.f32 %v713_v0, %v2095_v56 }
 0x1d6   : > { %776 = vst [vmem:[%s1818_s20 + $0xf0] sm:$0xff] %v744_v1  ;;  %777 = vst [vmem:[%s1818_s20 + $0xf8] sm:$0xff] %v745_v57 }
 0x1d7   : > { %1030 = shalt.err (!%p1027_p13)
}
 0x1d8   : > { %s1031_s16 = scalar_lea.hbm %s1881_s26, 4096  ;;  %s1035_s24 = scalar_lea.hbm %s1933_s2, 8192 }
 0x1d9   : > { %p1032_p7 = scmp.ne.s32.totalorder %s1881_s26, %s1031_s16  ;;  %p1036_p1 = scmp.lt.u32.totalorder %s1881_s26, %s1933_s2 }
 0x1da   : > { %p1037_p11 = scmp.lt.u32.totalorder %s1035_s24, %s1031_s16  ;;  %p1039_p9 = scmp.lt.u32.totalorder %s1031_s16, %s1881_s26 }
 0x1db   : > { %p1033_p3 = pnand %p1032_p7, %p2096_p10 }
 0x1dc   : > { %p1038_p8 = por %p1037_p11, %p1036_p1 }
 0x1dd   : > { %p1034_p12 = pneg %p1033_p3 }
 0x1de   : > { %p1040_p2 = por %p1039_p9, %p1038_p8 }
 0x1e0   : > { %p1041_p4 = pnand %p1040_p2, %p1034_p12 }
 0x1e2   : > { %1044 = shalt.err (!%p1041_p4)
}
 0x1e3   : > { %s1094_s25 = smov 256   ;;  %s1095_s29 = smov 16  }
 0x1e4   : > { %900 = dma.vmem_to_hbm [thread:$0]  (%p2096_p10), %s1883_s28, 4096, %s1881_s26, %s779_s13, %s1094_s25, %s1094_s25, %s1095_s29  }
 0x1e5 PF: > { %s807_s20 = sand.u32 1, %s1075_s9   ;;  %p2097_p5 = scmp.ne.s32.totalorder %s1970_s22, 0 }
 0x1e6   : > { %p2098_p0 = scmp.ge.s32.totalorder %s1087_s12, 2  ;;  %s808_s23 = scalar_lea.sflag [#allocation4], %s807_s20 }
 0x1e8   : > { %p911_p6 = pnand %p2098_p0, %p2097_p5 }
 0x1ea   : > { %1070 = dma.done.wait (!%p911_p6), %s808_s23, 4096  }
 0x1eb   : > { %1072 = vsyncadd (!%p911_p6), %s808_s23, 4294963200  ;;  %p16_p13 = scmp.ge.s32.totalorder %s1136_s15, 4   ;;  %s2099_s9 = smov %s1079_s10 }
 0x1ec   : > { %s2100_s10 = smov %s1083_s11  ;;  %s2101_s11 = smov %s1148_s18 }
 0x1ed   : > { %s2102_s12 = smov %s1136_s15  ;;  %18 = sbr.rel (!%p16_p13) target bundleno = 6 (0x6), region = 77 }
 0x1f4   :  { %813 = vsyncpa [#allocation3], 1 }
 0x1f5   :  { %815 = vsyncpa [#allocation3 + $0x1], 1 }
 0x1f6   :  { %816 = vsyncpa [#allocation6], 1 }
 0x1f7   :  { %817 = vsyncpa [#allocation4], 1 }
 0x1f8   :  { %819 = vsyncpa [#allocation4 + $0x1], 1 }

</bundles_post_ra>
